<compile_context>
chip_gen: v7x
topology: tpu7x:2x2x1
jax: 0.10.0
libtpu: 0.0.40
codegen_flags: <defaults>
</compile_context>

<pallas_src>
import functools

import jax
import jax.numpy as jnp
from jax.experimental import pallas as pl
from jax.experimental.pallas import tpu as pltpu


def _round_up(x, m):
    return ((x + m - 1) // m) * m


def _cdiv(a, b):
    return -(-a // b)


def _vmem_cap_bytes():
    # 75% of physical VMEM per TensorCore; conservative 48 MiB fallback (safe even on v7x).
    try:
        return (int(pltpu.get_tpu_info().vmem_capacity_bytes) * 3) // 4
    except Exception:
        return 48 * 1024 * 1024


def _auto_k_tile(I, max_tk):
    # Largest multiple of 128 that divides I and is <= max_tk (None if no clean K-tiling exists).
    best, t = None, 128
    while t <= min(I, max_tk):
        if I % t == 0:
            best = t
        t += 128
    return best


def _bert_output_kernel_resident(x_ref, w_ref, params_ref, res_ref, o_ref, *, eps, inv_h):
    # x_ref: (tm, I) activation row tile; w_ref: (I, H) VMEM-resident weight;
    # params_ref: (3, H) rows = [bias, gamma, beta]; res_ref/o_ref: (tm, H).
    h = jnp.dot(x_ref[...], w_ref[...], preferred_element_type=jnp.float32)
    bias = params_ref[0:1, :]
    gamma = params_ref[1:2, :]
    beta = params_ref[2:3, :]
    # TODO(synk): dropout is identity here (eval-mode semantics); training-mode masking not implemented.
    h = h + bias + res_ref[...].astype(jnp.float32)
    # Two-pass LayerNorm statistics (cancellation-safe).
    mean = jnp.sum(h, axis=-1, keepdims=True) * inv_h
    centered = h - mean
    var = jnp.sum(centered * centered, axis=-1, keepdims=True) * inv_h
    scale = jax.lax.rsqrt(var + eps) * gamma
    o_ref[...] = (centered * scale + beta).astype(o_ref.dtype)


def _bert_output_kernel_ktiled(x_ref, w_ref, params_ref, res_ref, o_ref, acc_ref, *, eps, inv_h):
    # Fallback for very large intermediate dims: K grid axis + resident f32 accumulator.
    k = pl.program_id(1)
    partial = jnp.dot(x_ref[...], w_ref[...], preferred_element_type=jnp.float32)

    @pl.when(k == 0)
    def _():
        # Fold bias into the first partial write: no zero pass, no extra add in the epilogue.
        acc_ref[...] = partial + params_ref[0:1, :]

    @pl.when(k > 0)
    def _():
        acc_ref[...] += partial

    @pl.when(k == pl.num_programs(1) - 1)
    def _():
        gamma = params_ref[1:2, :]
        beta = params_ref[2:3, :]
        # TODO(synk): dropout is identity here (eval-mode semantics); training-mode masking not implemented.
        h = acc_ref[...] + res_ref[...].astype(jnp.float32)
        mean = jnp.sum(h, axis=-1, keepdims=True) * inv_h
        centered = h - mean
        var = jnp.sum(centered * centered, axis=-1, keepdims=True) * inv_h
        scale = jax.lax.rsqrt(var + eps) * gamma
        o_ref[...] = (centered * scale + beta).astype(o_ref.dtype)


def bert_output(hidden_states, input_tensor, weight, bias, gamma, beta, *,
                eps=1e-12, tm=256, k_tile=None, matmul_dtype=None):
    """
    hidden_states: (M, I)   -- flattened (batch*seq, intermediate_size)
    input_tensor:  (M, H)   -- flattened (batch*seq, hidden_size)
    weight:        (I, H)   -- dense weight, [in, out] layout
    bias, gamma, beta: (H,)
    k_tile:        optional K-tile (multiple of 128 dividing I) to force the K-tiled fallback.
    matmul_dtype:  optionally cast matmul operands (e.g. jnp.bfloat16); accumulation / LN stay f32.
                   NOTE: casting (M, I) activations here costs an extra XLA HBM pass — in
                   production the producer should hand bf16 activations directly.
    """
    M, I = hidden_states.shape
    H = weight.shape[1]
    out_dtype = hidden_states.dtype

    if matmul_dtype is not None:
        hidden_states = hidden_states.astype(matmul_dtype)
        weight = weight.astype(matmul_dtype)

    x_b = jnp.dtype(hidden_states.dtype).itemsize
    w_b = jnp.dtype(weight.dtype).itemsize
    r_b = jnp.dtype(input_tensor.dtype).itemsize
    o_b = jnp.dtype(out_dtype).itemsize

    # Sublane packing for the row dim (8 for f32, 16 for bf16 operands/outputs).
    sublane = max(8, 32 // min(x_b, r_b, o_b))

    # Row tile: as large as requested, never larger than (sublane-rounded) M.
    tm = min(tm, _round_up(M, sublane))
    tm = _round_up(tm, sublane)
    # Keep >= 2 row tiles when M allows, so v7x's two TensorCores both get work on the
    # "parallel" row axis.
    if _cdiv(M, tm) < 2 and M > sublane:
        tm = _round_up(_cdiv(M, 2), sublane)
    n_rows = _cdiv(M, tm)

    # Pack the three (H,) parameter vectors into one grid-invariant (3, H) input.
    params = jnp.stack([bias, gamma, beta], axis=0).astype(jnp.float32)

    cap = _vmem_cap_bytes()
    # Resident-weight footprint (weight counted double to stay conservative).
    est_resident = (2 * I * H * w_b + 2 * tm * I * x_b
                    + 2 * tm * H * (r_b + o_b) + 2 * 3 * H * 4)

    use_resident = (k_tile is None) and (est_resident <= cap)
    if not use_resident and k_tile is None:
        k_tile = _auto_k_tile(I, max_tk=2048)
        if k_tile is None:
            use_resident = True  # no clean K-tiling available; keep the weight resident anyway.

    cost = pl.CostEstimate(
        flops=2 * M * I * H,
        transcendentals=0,
        bytes_accessed=M * I * x_b + I * H * w_b + M * H * r_b + M * H * o_b + 3 * H * 4,
    )

    if use_resident:
        kernel = functools.partial(_bert_output_kernel_resident, eps=float(eps), inv_h=1.0 / H)
        grid = (n_rows,)
        in_specs = [
            pl.BlockSpec((tm, I), lambda i: (i, 0)),   # streamed activation row tile
            pl.BlockSpec((I, H), lambda i: (0, 0)),    # VMEM-resident weight (DMA'd once)
            pl.BlockSpec((3, H), lambda i: (0, 0)),    # packed bias/gamma/beta
            pl.BlockSpec((tm, H), lambda i: (i, 0)),   # residual row tile
        ]
        out_specs = pl.BlockSpec((tm, H), lambda i: (i, 0))
        scratch = []
        dims = ("parallel",)
        vmem_limit = min(cap, max(32 * 1024 * 1024, 2 * est_resident))
    else:
        tk = int(k_tile)
        if I % tk != 0 or tk % 128 != 0:
            raise ValueError(f"k_tile={tk} must be a multiple of 128 that divides I={I}")
        kernel = functools.partial(_bert_output_kernel_ktiled, eps=float(eps), inv_h=1.0 / H)
        grid = (n_rows, I // tk)   # K axis innermost (reduction last)
        in_specs = [
            pl.BlockSpec((tm, tk), lambda i, k: (i, k)),
            pl.BlockSpec((tk, H), lambda i, k: (k, 0)),
            pl.BlockSpec((3, H), lambda i, k: (0, 0)),
            pl.BlockSpec((tm, H), lambda i, k: (i, 0)),
        ]
        out_specs = pl.BlockSpec((tm, H), lambda i, k: (i, 0))
        scratch = [pltpu.VMEM((tm, H), jnp.float32)]
        dims = ("parallel", "arbitrary")
        est_ktiled = (2 * tm * tk * x_b + 2 * tk * H * w_b
                      + 2 * tm * H * (r_b + o_b) + 2 * 3 * H * 4 + tm * H * 4)
        vmem_limit = min(cap, max(32 * 1024 * 1024, 2 * est_ktiled))

    return pl.pallas_call(
        kernel,
        out_shape=jax.ShapeDtypeStruct((M, H), out_dtype),
        grid_spec=pltpu.PrefetchScalarGridSpec(
            num_scalar_prefetch=0,
            grid=grid,
            in_specs=in_specs,
            out_specs=out_specs,
            scratch_shapes=scratch,
        ),
        compiler_params=pltpu.CompilerParams(
            dimension_semantics=dims,
            vmem_limit_bytes=int(vmem_limit),
        ),
        cost_estimate=cost,
    )(hidden_states, weight, params, input_tensor)


def reference(hidden_states, input_tensor, weight, bias, gamma, beta, eps=1e-12):
    h = hidden_states @ weight + bias
    h = h + input_tensor
    mean = jnp.mean(h, axis=-1, keepdims=True)
    var = jnp.mean((h - mean) ** 2, axis=-1, keepdims=True)
    return (h - mean) * jax.lax.rsqrt(var + eps) * gamma + beta


if __name__ == "__main__":
    # Small config: batch=2, seq=8, intermediate_size=256, hidden_size=128 (lane-aligned).
    batch, seq = 2, 8
    intermediate_size, hidden_size = 256, 128
    eps = 1e-12

    key = jax.random.PRNGKey(0)
    k1, k2, k3, k4 = jax.random.split(key, 4)

    hidden_states = jax.random.normal(k1, (batch, seq, intermediate_size), jnp.float32)
    input_tensor = jax.random.normal(k2, (batch, seq, hidden_size), jnp.float32)

    # Deterministic parameter init (nn.Linear-like scale), LayerNorm gamma=1, beta=0.
    weight = jax.random.normal(k3, (intermediate_size, hidden_size), jnp.float32) * 0.02
    bias = jax.random.normal(k4, (hidden_size,), jnp.float32) * 0.02
    gamma = jnp.ones((hidden_size,), jnp.float32)
    beta = jnp.zeros((hidden_size,), jnp.float32)

    M = batch * seq
    hs_2d = hidden_states.reshape(M, intermediate_size)
    res_2d = input_tensor.reshape(M, hidden_size)

    ref = reference(hs_2d, res_2d, weight, bias, gamma, beta, eps=eps)

    # 1) Default path: VMEM-resident weight, 1-D row grid, no accumulator scratch.
    out = bert_output(hs_2d, res_2d, weight, bias, gamma, beta, eps=eps)
    jax.block_until_ready(out)
    assert jnp.allclose(out, ref, atol=1e-5, rtol=1e-5), "resident-weight f32 mismatch"

    # 2) Forced K-tiled fallback path (used for very large intermediate dims).
    out_kt = bert_output(hs_2d, res_2d, weight, bias, gamma, beta, eps=eps, k_tile=128)
    jax.block_until_ready(out_kt)
    assert jnp.allclose(out_kt, ref, atol=1e-5, rtol=1e-5), "K-tiled f32 mismatch"

    # 3) bf16 matmul operands (f32 accumulation / LayerNorm): looser tolerance.
    out_bf16 = bert_output(hs_2d, res_2d, weight, bias, gamma, beta, eps=eps,
                           matmul_dtype=jnp.bfloat16)
    jax.block_until_ready(out_bf16)
    assert jnp.allclose(out_bf16, ref, atol=5e-2), "bf16 mismatch vs reference"

    print("KERNEL_OK")
</pallas_src>

<mosaic_0001>
module attributes {stable_mosaic.version = 11 : i64} {
  func.func @_bert_output_kernel_resident(%arg0: i32, %arg1: memref<8x256xf32, #tpu.memory_space<vmem>>, %arg2: memref<256x128xf32, #tpu.memory_space<vmem>>, %arg3: memref<3x128xf32, #tpu.memory_space<vmem>>, %arg4: memref<8x128xf32, #tpu.memory_space<vmem>>, %arg5: memref<8x128xf32, #tpu.memory_space<vmem>>) attributes {dimension_semantics = [#tpu.dimension_semantics<parallel>], iteration_bounds = array<i64: 2>, scalar_prefetch = 0 : i64, scratch_operands = 0 : i64, tpu.core_type = #tpu.core_type<tc>, window_params = [{transform_indices = @transform_0, window_bounds = array<i64: 8, 256>}, {pipeline_mode = #tpu.pipeline_mode<synchronous>, transform_indices = @transform_1, window_bounds = array<i64: 256, 128>}, {pipeline_mode = #tpu.pipeline_mode<synchronous>, transform_indices = @transform_2, window_bounds = array<i64: 3, 128>}, {transform_indices = @transform_3, window_bounds = array<i64: 8, 128>}, {transform_indices = @transform_4, window_bounds = array<i64: 8, 128>}]} {
    %c0 = arith.constant 0 : index
    %c0_0 = arith.constant 0 : index
    %0 = vector.load %arg1[%c0, %c0_0] : memref<8x256xf32, #tpu.memory_space<vmem>>, vector<8x256xf32>
    %c0_1 = arith.constant 0 : index
    %c0_2 = arith.constant 0 : index
    %1 = vector.load %arg2[%c0_1, %c0_2] : memref<256x128xf32, #tpu.memory_space<vmem>>, vector<256x128xf32>
    %cst = arith.constant dense<0.000000e+00> : vector<8x128xf32>
    %2 = tpu.matmul %0, %1, %cst {dimension_numbers = #tpu.dot_dimension_numbers<[1], [0], [0], [1], [0, 0, 1, 1], [], []>} : vector<8x256xf32>, vector<256x128xf32>, vector<8x128xf32> -> vector<8x128xf32>
    %c0_3 = arith.constant 0 : index
    %c0_4 = arith.constant 0 : index
    %3 = vector.load %arg3[%c0_3, %c0_4] : memref<3x128xf32, #tpu.memory_space<vmem>>, vector<1x128xf32>
    %c1 = arith.constant 1 : index
    %c0_5 = arith.constant 0 : index
    %4 = vector.load %arg3[%c1, %c0_5] : memref<3x128xf32, #tpu.memory_space<vmem>>, vector<1x128xf32>
    %c2 = arith.constant 2 : index
    %c0_6 = arith.constant 0 : index
    %5 = vector.load %arg3[%c2, %c0_6] : memref<3x128xf32, #tpu.memory_space<vmem>>, vector<1x128xf32>
    %6 = vector.broadcast %3 : vector<1x128xf32> to vector<8x128xf32>
    %7 = arith.addf %2, %6 : vector<8x128xf32>
    %c0_7 = arith.constant 0 : index
    %c0_8 = arith.constant 0 : index
    %8 = vector.load %arg4[%c0_7, %c0_8] : memref<8x128xf32, #tpu.memory_space<vmem>>, vector<8x128xf32>
    %9 = arith.addf %7, %8 : vector<8x128xf32>
    %cst_9 = arith.constant dense<0.000000e+00> : vector<8xf32>
    %10 = vector.multi_reduction <add>, %9, %cst_9 [1] : vector<8x128xf32> to vector<8xf32>
    %11 = vector.shape_cast %10 : vector<8xf32> to vector<8x1xf32>
    %cst_10 = arith.constant 7.812500e-03 : f32
    %12 = vector.broadcast %cst_10 : f32 to vector<8x1xf32>
    %13 = arith.mulf %11, %12 : vector<8x1xf32>
    %14 = vector.broadcast %13 : vector<8x1xf32> to vector<8x128xf32>
    %15 = arith.subf %9, %14 : vector<8x128xf32>
    %16 = arith.mulf %15, %15 : vector<8x128xf32>
    %cst_11 = arith.constant dense<0.000000e+00> : vector<8xf32>
    %17 = vector.multi_reduction <add>, %16, %cst_11 [1] : vector<8x128xf32> to vector<8xf32>
    %18 = vector.shape_cast %17 : vector<8xf32> to vector<8x1xf32>
    %cst_12 = arith.constant 7.812500e-03 : f32
    %19 = vector.broadcast %cst_12 : f32 to vector<8x1xf32>
    %20 = arith.mulf %18, %19 : vector<8x1xf32>
    %cst_13 = arith.constant 9.99999996E-13 : f32
    %21 = vector.broadcast %cst_13 : f32 to vector<8x1xf32>
    %22 = arith.addf %20, %21 : vector<8x1xf32>
    %23 = math.rsqrt %22 : vector<8x1xf32>
    %24 = vector.broadcast %23 : vector<8x1xf32> to vector<8x128xf32>
    %25 = vector.broadcast %4 : vector<1x128xf32> to vector<8x128xf32>
    %26 = arith.mulf %24, %25 : vector<8x128xf32>
    %27 = arith.mulf %15, %26 : vector<8x128xf32>
    %28 = vector.broadcast %5 : vector<1x128xf32> to vector<8x128xf32>
    %29 = arith.addf %27, %28 : vector<8x128xf32>
    %c0_14 = arith.constant 0 : index
    %c0_15 = arith.constant 0 : index
    %30 = vector.load %arg5[%c0_14, %c0_15] : memref<8x128xf32, #tpu.memory_space<vmem>>, vector<8x128xf32>
    tpu.vector_store %arg5[%c0_14, %c0_15], %29 {strides = array<i32>} : memref<8x128xf32, #tpu.memory_space<vmem>>, vector<8x128xf32>,
    return
  }
  func.func @transform_0(%arg0: i32) -> (i32, i32) {
    %c0_i32 = arith.constant 0 : i32
    %c0_i32_0 = arith.constant 0 : i32
    return %arg0, %c0_i32 : i32, i32
  }
  func.func @transform_1(%arg0: i32) -> (i32, i32) {
    %c0_i32 = arith.constant 0 : i32
    %c0_i32_0 = arith.constant 0 : i32
    %c0_i32_1 = arith.constant 0 : i32
    return %c0_i32, %c0_i32_0 : i32, i32
  }
  func.func @transform_2(%arg0: i32) -> (i32, i32) {
    %c0_i32 = arith.constant 0 : i32
    %c0_i32_0 = arith.constant 0 : i32
    %c0_i32_1 = arith.constant 0 : i32
    return %c0_i32, %c0_i32_0 : i32, i32
  }
  func.func @transform_3(%arg0: i32) -> (i32, i32) {
    %c0_i32 = arith.constant 0 : i32
    %c0_i32_0 = arith.constant 0 : i32
    return %arg0, %c0_i32 : i32, i32
  }
  func.func @transform_4(%arg0: i32) -> (i32, i32) {
    %c0_i32 = arith.constant 0 : i32
    %c0_i32_0 = arith.constant 0 : i32
    return %arg0, %c0_i32 : i32, i32
  }
}

</mosaic_0001>

<bundles_post_ra>
// kernel: tpu_custom_call.1
= control target key start
LH: loop header
LB: loop body
LE: loop exit
PB: predicated region body
PF: predicated region fallthrough
CT: control target
= control target key end

     0   :  { %s1126_s0 = inlined_call_operand.hbm [shape: f32[16,256], index: 0, kind: input, shape index: {}]   ;;  %s1127_s1 = inlined_call_operand.hbm [shape: f32[256,128], index: 1, kind: input, shape index: {}]   ;;  %s1128_s2 = inlined_call_operand.vmem [shape: f32[3,128], index: 2, kind: input, shape index: {}]   ;;  %s1129_s3 = inlined_call_operand.hbm [shape: f32[16,128], index: 3, kind: input, shape index: {}]   ;;  %s1130_s4 = inlined_call_operand.hbm [shape: f32[16,128], index: 4, kind: output, shape index: {}]  }
   0x1   :  { %1138 = sst [smem:[#allocation13_spill]] %s1126_s0 }
   0x2   :  { %9 = vsyncpa [#allocation3], 0 }
   0x3   :  { %11 = vsyncpa [#allocation3 + $0x1], 0 }
   0x4   :  { %12 = vsyncpa [#allocation6], 0 }
   0x5   :  { %13 = vsyncpa [#allocation4], 0 }
   0x6   :  { %15 = vsyncpa [#allocation4 + $0x1], 0  ;;  %s862_s15 = smov 0   ;;  %s864_s16 = smov 0  }
   0x7   :  { %s866_s17 = smov 0   ;;  %s868_s18 = smov 0  }
   0x8 LB: > { %s883_s19 = sadd.s32 1, %s829_s18   ;;  %s28_s20 = sadd.s32 1, %s825_s17  ;;  %s829_s18 = sphi %s868_s18, %s1159_s18   ;;  %s825_s17 = sphi %s866_s17, %s1158_s17   ;;  %s821_s16 = sphi %s864_s16, %s1157_s16   ;;  %s817_s15 = sphi %s862_s15, %s1156_s15  }
   0x9   : > { %s25_s21 = ssub.s32 %s829_s18, %s883_s19  ;;  %p35_p0 = scmp.ne.s32.totalorder %s825_s17, %s821_s16 }
   0xa   : > { %p26_p1 = scmp.eq.s32.totalorder %s25_s21, 0  ;;  %p36_p2 = scmp.eq.s32.totalorder %s829_s18, 0 }
   0xb   : > { %p627_p4 = scmp.lt.s32.totalorder %s829_s18, 2  ;;  %s175_s23 = sand.u32 1, %s829_s18  }
   0xc   : > { %s894_s22 = scalar_select %p26_p1, %s825_s17, %s28_s20  }
   0xd   : > { %p37_p5 = por %p36_p2, %p35_p0  ;;  %s177_s24 = sand.u32 1, %s825_s17  }
   0xe   : > { %s516_s25 = sshll.u32 %s177_s24, 4  ;;  %s533_s26 = sshll.u32 %s829_s18, 8 }
   0xf   : > { %s1139_s0 = sld [smem:[#allocation13_spill]]  ;;  %s179_s30 = scalar_lea.vmem [#allocation2], %s516_s25 }
  0x10   : > { %s187_s5 = sshll.u32 %s179_s30, 4  ;;  %p907_p6 = pnand %p627_p4, %p37_p5  ;;  %s911_s5 = int_to_ptr.vmem [resolvable:$true] %s187_s5 }
  0x11   : > { %s913_s7 = sshll.u32 %s177_s24, 3  ;;  %s915_s8 = scalar_lea.sflag [#allocation3], %s175_s23 }
  0x12   : > { %s1140_s6 = scalar_select %p907_p6, 1, 0 }
  0x13   : > { %p1132_p8 = pneg %p907_p6 }
  0x15   : > { %s905_s29 = scalar_lea.hbm %s1139_s0, %s533_s26  ;;  %s672_s12 = scalar_lea.hbm %s1139_s0, 512 }
  0x16   : > { %s667_s9 = scalar_lea.hbm %s905_s29, 256  ;;  %p673_p11 = scmp.lt.u32.totalorder %s905_s29, %s1139_s0 }
  0x17   : > { %p668_p7 = scmp.ne.s32.totalorder %s905_s29, %s667_s9  ;;  %p674_p12 = scmp.lt.u32.totalorder %s672_s12, %s667_s9 }
  0x18   : > { %p676_p1 = scmp.lt.u32.totalorder %s667_s9, %s905_s29 }
  0x19   : > { %p670_p9 = pnand %p1132_p8, %p668_p7  ;;  %p675_p13 = por %p674_p12, %p673_p11 }
  0x1b   : > { %p671_p10 = pneg %p670_p9  ;;  %p677_p2 = por %p676_p1, %p675_p13 }
  0x1d   : > { %p678_p4 = pnand %p677_p2, %p671_p10 }
  0x1f   : > { %681 = shalt.err (!%p678_p4)
}
  0x20   : > { %s682_s20 = scalar_lea.vmem %s911_s5, 256  ;;  %s831_s21 = smov [#allocation2]  }
  0x21   : > { %p683_p5 = scmp.ne.s32.totalorder %s911_s5, %s682_s20  ;;  %s687_s23 = sshll.u32 %s831_s21, 4  ;;  %s688_s23 = int_to_ptr.vmem [resolvable:$false] %s687_s23 }
  0x22   : > { %s689_s24 = scalar_lea.vmem %s688_s23, 512  ;;  %p690_p3 = scmp.lt.s32.totalorder %s911_s5, %s688_s23 }
  0x23   : > { %p685_p7 = pnand %p683_p5, %p1132_p8  ;;  %p691_p11 = scmp.lt.s32.totalorder %s689_s24, %s682_s20 }
  0x25   : > { %p686_p9 = pneg %p685_p7  ;;  %p692_p12 = por %p691_p11, %p690_p3 }
  0x27   : > { %p693_p13 = pnand %p692_p12, %p686_p9 }
  0x29   : > { %696 = shalt.err (!%p693_p13)
}
  0x2a   : > { %618 = dma.hbm_to_vmem [thread:$0]  (!%p907_p6), %s905_s29, 256, %s911_s5, %s915_s8  }
  0x2b   : > { %s944_s25 = sadd.s32 4294967295, %s829_s18   ;;  %s512_s26 = sadd.s32 4294967294, %s829_s18  }
  0x2c   : > { %p41_p3 = scmp.ne.s32.totalorder %s821_s16, %s817_s15  ;;  %p1131_p10 = scmp.eq.s32.totalorder %s944_s25, 0 }
  0x2d   : > { %p133_p1 = scmp.eq.s32.totalorder %s944_s25, 1  ;;  %p139_p2 = scmp.eq.s32.totalorder %s512_s26, 1 }
  0x2e   : > { %p513_p4 = scmp.ge.s32.totalorder %s829_s18, 1  ;;  %p954_p5 = por %p1131_p10, %p41_p3 }
  0x2f   : > { %p961_p7 = por %p133_p1, %p35_p0  ;;  %p965_p9 = por %p139_p2, %p41_p3 }
  0x30   : > { %s1141_s27 = scalar_select %p954_p5, 1, 0 }
  0x31   : > { %s1142_s28 = scalar_select %p961_p7, 1, 0 }
  0x32   : > { %s1143_s29 = scalar_select %p965_p9, 1, 0 }
  0x33   : > { %p146_p11 = scmp.lt.s32.totalorder %s829_s18, 3  ;;  %s832_s5 = smov [#allocation5]  }
  0x34   : > { %s158_s9 = sshll.u32 %s832_s5, 4  ;;  %s520_s10 = sshll.u32 %s829_s18, 7  ;;  %s974_s9 = int_to_ptr.vmem [resolvable:$true] %s158_s9 }
  0x35   : > { %p970_p12 = pnand %p513_p4, %p146_p11  ;;  %s988_s14 = scalar_lea.hbm %s1129_s3, %s520_s10 }
  0x36   : > { %s198_s20 = scalar_lea.vmem [#allocation7], %s913_s7  ;;  %s697_s26 = scalar_lea.hbm %s1127_s1, 4096 }
  0x37   : > { %s1144_s30 = scalar_select %p970_p12, 1, 0 }
  0x38   : > { %p611_p13 = pneg %p970_p12  ;;  %s205_s21 = sshll.u32 %s198_s20, 4  ;;  %s991_s21 = int_to_ptr.vmem [resolvable:$true] %s205_s21 }
  0x39   : > { %p698_p3 = scmp.ne.s32.totalorder %s1127_s1, %s697_s26  ;;  %p704_p11 = scmp.lt.u32.totalorder %s697_s26, %s1127_s1 }
  0x3a   : > { %p981_p0 = pnand %p611_p13, %p1131_p10 }
  0x3c   : > { %p699_p1 = pneg %p981_p0 }
  0x3e   : > { %p700_p2 = pnand %p699_p1, %p698_p3 }
  0x40   : > { %p701_p4 = pneg %p700_p2 }
  0x42   : > { %p706_p13 = pnand %p704_p11, %p701_p4 }
  0x44   : > { %709 = shalt.err (!%p706_p13)
}
  0x45   : > { %s710_s7 = scalar_lea.vmem %s974_s9, 4096  ;;  %p718_p7 = scmp.lt.s32.totalorder %s974_s9, %s974_s9 }
  0x46   : > { %p711_p10 = scmp.ne.s32.totalorder %s974_s9, %s710_s7  ;;  %p719_p5 = scmp.lt.s32.totalorder %s710_s7, %s710_s7 }
  0x48   : > { %p713_p8 = pnand %p711_p10, %p699_p1  ;;  %p720_p12 = por %p719_p5, %p718_p7 }
  0x4a   : > { %p714_p9 = pneg %p713_p8 }
  0x4c   : > { %p721_p6 = pnand %p720_p12, %p714_p9 }
  0x4e   : > { %724 = shalt.err (!%p721_p6)
}
  0x4f   : > { %s833_s0 = smov 128   ;;  %s834_s10 = smov 8  }
  0x50   : > { %614 = dma.hbm_to_vmem [thread:$0]  (!%p981_p0), %s1127_s1, 4096, %s974_s9, [#allocation6], %s833_s0, %s833_s0, %s834_s10  }
  0x51   : > { %s725_s24 = scalar_lea.hbm %s988_s14, 128  ;;  %p1146_p10 = scmp.ne.s32.totalorder %s1140_s6, 0 }
  0x52   : > { %p726_p8 = scmp.ne.s32.totalorder %s988_s14, %s725_s24  ;;  %s730_s12 = scalar_lea.hbm %s1129_s3, 256 }
  0x53   : > { %p1147_p5 = pneg %p1146_p10  ;;  %p731_p9 = scmp.lt.u32.totalorder %s988_s14, %s1129_s3 }
  0x54   : > { %p732_p12 = scmp.lt.u32.totalorder %s730_s12, %s725_s24  ;;  %p734_p1 = scmp.lt.u32.totalorder %s725_s24, %s988_s14 }
  0x55   : > { %p728_p7 = pnand %p726_p8, %p1147_p5 }
  0x56   : > { %p733_p3 = por %p732_p12, %p731_p9 }
  0x57   : > { %p729_p6 = pneg %p728_p7 }
  0x58   : > { %p735_p2 = por %p734_p1, %p733_p3 }
  0x5a   : > { %p736_p4 = pnand %p735_p2, %p729_p6 }
  0x5c   : > { %739 = shalt.err (!%p736_p4)
}
  0x5d   : > { %s740_s9 = scalar_lea.vmem %s991_s21, 128  ;;  %p1148_p11 = pmov %p1147_p5 }
  0x5e   : > { %p741_p0 = scmp.ne.s32.totalorder %s991_s21, %s740_s9  ;;  %s835_s11 = smov [#allocation7]  }
  0x5f   : > { %s745_s0 = sshll.u32 %s835_s11, 4  ;;  %s746_s0 = int_to_ptr.vmem [resolvable:$false] %s745_s0 }
  0x60   : > { %p743_p13 = pnand %p741_p0, %p1148_p11  ;;  %s747_s10 = scalar_lea.vmem %s746_s0, 256 }
  0x61   : > { %p748_p5 = scmp.lt.s32.totalorder %s991_s21, %s746_s0  ;;  %p749_p7 = scmp.lt.s32.totalorder %s747_s10, %s740_s9 }
  0x62   : > { %p744_p8 = pneg %p743_p13 }
  0x63   : > { %p750_p9 = por %p749_p7, %p748_p5 }
  0x65   : > { %p751_p12 = pnand %p750_p9, %p744_p8 }
  0x67   : > { %754 = shalt.err (!%p751_p12)
}
  0x68   : > { %621 = dma.hbm_to_vmem [thread:$0]  (!%p1146_p10), %s988_s14, 128, %s991_s21, %s915_s8  }
  0x69   : > { %p1149_p6 = scmp.ne.s32.totalorder %s1144_s30, 0 }
  0x6a   : > { %s216_s20 = sand.u32 (!%p1149_p6), 1, %s944_s25   ;;  %s1042_s23 = sand.u32 (!%p1149_p6), 1, %s821_s16  }
  0x6b   : > { %214 = sbr.rel (%p1149_p6) target bundleno = 700 (0x2bc), region = 36  ;;  %s522_s24 = sshll.u32 (!%p1149_p6), %s1042_s23, 4 }
  0x6c   : > { %s217_s26 = scalar_lea.sflag (!%p1149_p6), [#allocation3], %s216_s20  ;;  %s1045_s5 = scalar_lea.vmem (!%p1149_p6), [#allocation2], %s522_s24 }
  0x6d   : > { %p1150_p3 = scmp.ne.s32.totalorder (!%p1149_p6), %s1141_s27, 0 }
  0x72   : > { %800 = dma.done.wait (%p1150_p3), %s217_s26, 256  }
  0x73   : > { %802 = vsyncadd (%p1150_p3), %s217_s26, 4294967040  ;;  %p1151_p10 = scmp.eq.s32.totalorder %s944_s25, 0 }
  0x75   : > { %804 = dma.done.wait (%p1151_p10), [#allocation6], 4096   ;;  %p1152_p1 = pmov %p1151_p10 }
  0x76   : > { %s524_s6 = sshll.u32 %s1042_s23, 3 }
  0x77   : > { %806 = vsyncadd (%p1152_p1), [#allocation6], 4294963200  ;;  %s1058_s8 = scalar_lea.vmem [#allocation7], %s524_s6 }
  0x78   : > { %808 = dma.done.wait (%p1150_p3), %s217_s26, 128  }
  0x79   : > { %810 = vsyncadd (%p1150_p3), %s217_s26, 4294967168  ;;  %v281_v0 = vld [vmem:[#allocation5 + $0x80] sm:$0xff]  ;;  %v282_v1 = vld [vmem:[#allocation5 + $0x88] sm:$0xff]  ;;  %s530_s7 = sshll.u32 %s944_s25, 7  ;;  %s262_s9 = scalar_lea.vmem [#allocation8], %s524_s6 }
  0x7a   : > { %v265_v2 = vld [vmem:[#allocation5] sm:$0xff]  ;;  %v569_v3 = vpack.c.bf16 %v282_v1, %v281_v0  ;;  %v266_v4 = vld [vmem:[#allocation5 + $0x8] sm:$0xff]  ;;  %v283_v5 = vld [vmem:[#allocation5 + $0x90] sm:$0xff]  ;;  %s412_s11 = sshll.u32 %s262_s9, 4  ;;  %s1082_s20 = scalar_lea.hbm %s1130_s4, %s530_s7  ;;  %s1084_s11 = int_to_ptr.vmem [resolvable:$true] %s412_s11 }
  0x7b   : > { %v284_v6 = vld [vmem:[#allocation5 + $0x98] sm:$0xff]  ;;  %v571_v7 = vpack.c.bf16 %v266_v4, %v265_v2  ;;  %v267_v9 = vld [vmem:[#allocation5 + $0x10] sm:$0xff]  ;;  %v285_v11 = vld [vmem:[#allocation5 + $0xa0] sm:$0xff]  ;;  %s399_s24 = scalar_lea.sflag [#allocation4], %s1042_s23  ;;  %s755_s26 = scalar_lea.vmem %s1084_s11, 128 }
  0x7c   : > { %v573_v8 = vpack.c.bf16 %v284_v6, %v283_v5  ;;  %v268_v10 = vld [vmem:[#allocation5 + $0x18] sm:$0xff]  ;;  %570 = vmatprep.subr.bf16.mxu0 %v569_v3  ;;  %v286_v12 = vld [vmem:[#allocation5 + $0xa8] sm:$0xff]  ;;  %v269_v15 = vld [vmem:[#allocation5 + $0x20] sm:$0xff]  ;;  %p756_p2 = scmp.ne.s32.totalorder %s1084_s11, %s755_s26  ;;  %p1153_p4 = scmp.ne.s32.totalorder %s1142_s28, 0 }
  0x7d   : > { %572 = vmatpush3.bf16.msra.mxu0 %v571_v7  ;;  %v575_v13 = vpack.c.bf16 %v268_v10, %v267_v9  ;;  %v577_v14 = vpack.c.bf16 %v286_v12, %v285_v11  ;;  %v270_v16 = vld [vmem:[#allocation5 + $0x28] sm:$0xff]  ;;  %v287_v17 = vld [vmem:[#allocation5 + $0xb0] sm:$0xff]  ;;  %v288_v18 = vld [vmem:[#allocation5 + $0xb8] sm:$0xff]  ;;  %s836_s25 = smov [#allocation8]  }
  0x7e   : > { %574 = vmatprep.subr.bf16.mxu0 %v573_v8  ;;  %v579_v19 = vpack.c.bf16 %v270_v16, %v269_v15  ;;  %v581_v20 = vpack.c.bf16 %v288_v18, %v287_v17  ;;  %v271_v21 = vld [vmem:[#allocation5 + $0x30] sm:$0xff]  ;;  %v272_v22 = vld [vmem:[#allocation5 + $0x38] sm:$0xff]  ;;  %v289_v23 = vld [vmem:[#allocation5 + $0xc0] sm:$0xff]  ;;  %p757_p0 = pnand %p756_p2, %p1153_p4 }
  0x7f   : > { %v290_v24 = vld [vmem:[#allocation5 + $0xc8] sm:$0xff]  ;;  %v583_v26 = vpack.c.bf16 %v272_v22, %v271_v21  ;;  %v273_v28 = vld [vmem:[#allocation5 + $0x40] sm:$0xff]  ;;  %v291_v30 = vld [vmem:[#allocation5 + $0xd0] sm:$0xff] }
  0x80   : > { %v264_v25 = vld [vmem:[%s1045_s5 + $0x8] sm:$0xff]  ;;  %v585_v27 = vpack.c.bf16 %v290_v24, %v289_v23  ;;  %v275_v34 = vld [vmem:[#allocation5 + $0x50] sm:$0xff]  ;;  %v293_v36 = vld [vmem:[#allocation5 + $0xe0] sm:$0xff]  ;;  %p758_p11 = pneg %p757_p0 }
  0x81   : > { %576 = vmatpush3.bf16.msra.mxu0 %v575_v13  ;;  %368 = vmatprep.mubr.f32.mxu0 %v264_v25  ;;  %v274_v29 = vld [vmem:[#allocation5 + $0x48] sm:$0xff]  ;;  %v292_v31 = vld [vmem:[#allocation5 + $0xd8] sm:$0xff]  ;;  %v277_v40 = vld [vmem:[#allocation5 + $0x60] sm:$0xff] }
  0x82   : > { %578 = vmatprep.subr.bf16.mxu0 %v577_v14  ;;  %v587_v32 = vpack.c.bf16 %v274_v29, %v273_v28  ;;  %v589_v33 = vpack.c.bf16 %v292_v31, %v291_v30  ;;  %v276_v35 = vld [vmem:[#allocation5 + $0x58] sm:$0xff]  ;;  %v294_v37 = vld [vmem:[#allocation5 + $0xe8] sm:$0xff]  ;;  %v295_v42 = vld [vmem:[#allocation5 + $0xf0] sm:$0xff] }
  0x83   : > { %v591_v38 = vpack.c.bf16 %v276_v35, %v275_v34  ;;  %v593_v39 = vpack.c.bf16 %v294_v37, %v293_v36  ;;  %v278_v41 = vld [vmem:[#allocation5 + $0x68] sm:$0xff]  ;;  %v296_v43 = vld [vmem:[#allocation5 + $0xf8] sm:$0xff]  ;;  %v279_v46 = vld [vmem:[#allocation5 + $0x70] sm:$0xff] }
  0x84   : > { %v595_v44 = vpack.c.bf16 %v278_v41, %v277_v40  ;;  %v597_v45 = vpack.c.bf16 %v296_v43, %v295_v42  ;;  %v280_v47 = vld [vmem:[#allocation5 + $0x78] sm:$0xff]  ;;  %v263_v49 = vld [vmem:[%s1045_s5] sm:$0xff]  ;;  %s759_s5 = sshll.u32 %s836_s25, 4  ;;  %s760_s5 = int_to_ptr.vmem [resolvable:$false] %s759_s5 }
  0x85   : > { %580 = vmatpush3.bf16.msra.mxu0 %v579_v19  ;;  %v599_v48 = vpack.c.bf16 %v280_v47, %v279_v46  ;;  %v526_v51 = vld [vmem:[%s1128_s2] ss:$0 sm:$0xff]  ;;  %v527_v0 = vld [vmem:[%s1128_s2 + $0x1] ss:$0 sm:$0xff]  ;;  %v528_v3 = vld [vmem:[%s1128_s2 + $0x2] ss:$0 sm:$0xff]  ;;  %p762_p13 = scmp.lt.s32.totalorder %s1084_s11, %s760_s5 }
  0x86   : > { %582 = vmatprep.subr.bf16.mxu0 %v581_v20  ;;  %v374_v54 = vld [vmem:[%s1058_s8] sm:$0xff]  ;;  %s761_s6 = scalar_lea.vmem %s760_s5, 256 }
  0x87   : > { %p763_p8 = scmp.lt.s32.totalorder %s761_s6, %s755_s26 }
  0x89   : > { %584 = vmatpush3.bf16.msra.mxu0 %v583_v26  ;;  %p764_p5 = por %p763_p8, %p762_p13 }
  0x8a   : > { %586 = vmatprep.subr.bf16.mxu0 %v585_v27 }
  0x8b   : > { %p765_p7 = pnand %p764_p5, %p758_p11 }
  0x8d   : > { %588 = vmatpush3.bf16.msra.mxu0 %v587_v32 }
  0x8e   : > { %590 = vmatprep.subr.bf16.mxu0 %v589_v33 }
  0x91   : > { %592 = vmatpush3.bf16.msra.mxu0 %v591_v38 }
  0x92   : > { %594 = vmatprep.subr.bf16.mxu0 %v593_v39 }
  0x95   : > { %596 = vmatpush3.bf16.msra.mxu0 %v595_v44 }
  0x96   : > { %598 = vmatprep.subr.bf16.mxu0 %v597_v45 }
  0x99   : > { %600 = vmatpush3.bf16.msra.mxu0 %v599_v48 }
  0x9c   : > { %369 = vmatmul.mubr.f32.vlgmr.msra.gmra.mrb[0].mxu0 %v263_v49 }
 0x16f   : > { %v566_v50 = vpop.f32.mrb[0].mxu0 }
 0x170   : > { %v567_v52 = vpop.f32.mrb[1].mxu0 }
 0x171   : > { %v568_v53 = vadd.f32 %v567_v52, %v566_v50 }
 0x173   : > { %v371_v55 = vadd.f32 %v568_v53, %v526_v51 }
 0x175   : > { %v375_v56 = vadd.f32 %v374_v54, %v371_v55 }
 0x177   : > { %376 = vadd.xlane.f32.xlu0 %v375_v56 }
 0x204   : > { %v377_v57 = vpop.xlane.xlu0 %376 }
 0x205   : > { %v378_v58 = vmul.f32 0.0078125, %v377_v57 }
 0x207   : > { %v379_v59 = vsub.f32 %v375_v56, %v378_v58 }
 0x209   : > { %v380_v60 = vmul.f32 %v379_v59, %v379_v59 }
 0x20b   : > { %381 = vadd.xlane.f32.xlu0 %v380_v60 }
 0x298   : > { %v382_v61 = vpop.xlane.xlu0 %381 }
 0x299   : > { %v383_v62 = vmul.f32 0.0078125, %v382_v61 }
 0x29b   : > { %v384_v63 = vadd.f32 1e-12, %v383_v62 }
 0x29d   : > { %665 = vrsqrt.f32 %v384_v63 }
 0x2a7   : > { %v666_v1 = vpop.eup %665 }
 0x2a8   : > { %v390_v2 = vmul.f32 %v666_v1, %v527_v0 }
 0x2aa   : > { %v391_v4 = vmul.f32 %v390_v2, %v379_v59 }
 0x2ac   : > { %v396_v5 = vadd.f32 %v528_v3, %v391_v4 }
 0x2ae   : > { %397 = vst [vmem:[%s262_s9] sm:$0xff] %v396_v5 }
 0x2af   : > { %768 = shalt.err (!%p765_p7)
}
 0x2b0   : > { %s769_s23 = scalar_lea.hbm %s1082_s20, 128  ;;  %s773_s30 = scalar_lea.hbm %s1130_s4, 256 }
 0x2b1   : > { %p770_p9 = scmp.ne.s32.totalorder %s1082_s20, %s769_s23  ;;  %p774_p3 = scmp.lt.u32.totalorder %s1082_s20, %s1130_s4 }
 0x2b2   : > { %p775_p10 = scmp.lt.u32.totalorder %s773_s30, %s769_s23  ;;  %p777_p2 = scmp.lt.u32.totalorder %s769_s23, %s1082_s20 }
 0x2b3   : > { %p771_p12 = pnand %p770_p9, %p1153_p4 }
 0x2b4   : > { %p776_p1 = por %p775_p10, %p774_p3 }
 0x2b5   : > { %p772_p6 = pneg %p771_p12 }
 0x2b6   : > { %p778_p0 = por %p777_p2, %p776_p1 }
 0x2b8   : > { %p779_p11 = pnand %p778_p0, %p772_p6 }
 0x2ba   : > { %782 = shalt.err (!%p779_p11)
}
 0x2bb   : > { %609 = dma.vmem_to_hbm [thread:$0]  (%p1153_p4), %s1084_s11, 128, %s1082_s20, %s399_s24  }
 0x2bc PF: > { %s424_s12 = sand.u32 1, %s817_s15   ;;  %p1154_p13 = scmp.ne.s32.totalorder %s1143_s29, 0 }
 0x2bd   : > { %p1155_p8 = scmp.ge.s32.totalorder %s829_s18, 2  ;;  %s425_s13 = scalar_lea.sflag [#allocation4], %s424_s12 }
 0x2bf   : > { %p623_p5 = pnand %p1155_p8, %p1154_p13 }
 0x2c1   : > { %812 = dma.done.wait (!%p623_p5), %s425_s13, 128  }
 0x2c2   : > { %814 = vsyncadd (!%p623_p5), %s425_s13, 4294967168  ;;  %p18_p7 = scmp.ge.s32.totalorder %s883_s19, 4   ;;  %s1156_s15 = smov %s821_s16 }
 0x2c3   : > { %s1157_s16 = smov %s825_s17  ;;  %s1158_s17 = smov %s894_s22 }
 0x2c4   : > { %s1159_s18 = smov %s883_s19  ;;  %20 = sbr.rel (!%p18_p7) target bundleno = 8 (0x8), region = 96 }
 0x2cb   :  { %430 = vsyncpa [#allocation3], 1 }
 0x2cc   :  { %432 = vsyncpa [#allocation3 + $0x1], 1 }
 0x2cd   :  { %433 = vsyncpa [#allocation6], 1 }
 0x2ce   :  { %434 = vsyncpa [#allocation4], 1 }
 0x2cf   :  { %436 = vsyncpa [#allocation4 + $0x1], 1 }

</bundles_post_ra>
